<compile_context>
chip_gen: v6e
topology: v6e:2x2x1
jax: 0.10.0
libtpu: 0.0.40
codegen_flags: <defaults>
</compile_context>

<pallas_src>
import functools
import numpy as np
import jax
import jax.numpy as jnp
from jax.experimental import pallas as pl
from jax.experimental.pallas import tpu as pltpu

LATENT = 32
HID = 32 * 4 * 4        # 512: flattened (32, 4, 4) output of fc+deconv1
OUT_VALID = 1 * 8 * 8   # 64:  flattened (1, 8, 8) output of deconv2
OUT_PAD = 128           # lane-dense padded N for the last matmul / output store
TB_MAX = 256            # max batch tile per grid step


# ---------------- host-side parameter lowering (plain numpy glue) ----------------

def convt_to_matrix(w, b, h_in, w_in, stride, pad, out_pad):
    """Lower a ConvTranspose2d (PyTorch weight layout (C_in, C_out, kh, kw)) to a dense
    matrix mapping flattened NCHW input (C_in*h_in*w_in) -> flattened NCHW output."""
    w = np.asarray(w, np.float32)
    b = np.asarray(b, np.float32)
    c_in, c_out, kh, kw = w.shape
    h_out = (h_in - 1) * stride - 2 * pad + kh + out_pad
    w_out = (w_in - 1) * stride - 2 * pad + kw + out_pad
    M = np.zeros((c_in * h_in * w_in, c_out * h_out * w_out), np.float32)
    for ci in range(c_in):
        for ih in range(h_in):
            for iw in range(w_in):
                row = ci * h_in * w_in + ih * w_in + iw
                for co in range(c_out):
                    for dh in range(kh):
                        for dw in range(kw):
                            oh = ih * stride - pad + dh
                            ow = iw * stride - pad + dw
                            if 0 <= oh < h_out and 0 <= ow < w_out:
                                col = co * h_out * w_out + oh * w_out + ow
                                M[row, col] += w[ci, co, dh, dw]
    bias_flat = np.repeat(b, h_out * w_out).astype(np.float32)  # per-(co, oh, ow)
    return M, bias_flat, (h_out, w_out)


def convt_ref_np(x, w, b, stride, pad, out_pad):
    """Pure-numpy reference ConvTranspose2d (NCHW) for correctness checking."""
    B, c_in, H, W = x.shape
    _, c_out, kh, kw = w.shape
    Ho = (H - 1) * stride - 2 * pad + kh + out_pad
    Wo = (W - 1) * stride - 2 * pad + kw + out_pad
    out = np.zeros((B, c_out, Ho, Wo), np.float32)
    for ih in range(H):
        for iw in range(W):
            contrib = np.einsum("bc,cokl->bokl", x[:, :, ih, iw], w)
            for dh in range(kh):
                for dw in range(kw):
                    oh = ih * stride - pad + dh
                    ow = iw * stride - pad + dw
                    if 0 <= oh < Ho and 0 <= ow < Wo:
                        out[:, :, oh, ow] += contrib[:, :, dh, dw]
    return out + b.reshape(1, -1, 1, 1)


# ---------------- Pallas kernel: 2 matmuls + bias + ReLU + sigmoid ----------------

def decoder_kernel(z_ref, w1_ref, w2_ref, b_ref, out_ref):
    # biases packed into one (1, 640) buffer: lanes [0:512] = fused fc+deconv1 bias,
    # lanes [512:640] = padded deconv2 bias. Slices are 128-lane aligned.
    b1 = b_ref[:, :HID]                 # (1, 512)
    b2 = b_ref[:, HID:HID + OUT_PAD]    # (1, 128)
    # fused (fc + deconv1): f32 weights (accuracy), f32 accumulate, f32 VPU ops.
    h1 = jnp.dot(z_ref[...], w1_ref[...], preferred_element_type=jnp.float32) + b1
    h1 = jnp.maximum(h1, 0.0)
    # deconv2 (bf16 weights, lane-padded N=128) + sigmoid.
    h2 = jnp.dot(h1.astype(w2_ref.dtype), w2_ref[...],
                 preferred_element_type=jnp.float32) + b2
    out_ref[...] = jax.nn.sigmoid(h2)


@jax.jit
def decoder_forward(z, w1_fused, w2_pad, b_packed):
    """z: (B, LATENT) f32. Returns (B, 1, 8, 8) f32. Entire forward fused under one jit."""
    B = z.shape[0]
    # batch tile: sublane-quantum rounded, capped at TB_MAX; pad B up to a multiple of it.
    b8 = -(-B // 8) * 8
    tb = min(TB_MAX, b8)
    b_pad = -(-b8 // tb) * tb
    if b_pad != B:
        z = jnp.pad(z, ((0, b_pad - B), (0, 0)))

    cost = pl.CostEstimate(
        flops=2 * b_pad * (LATENT * HID + HID * OUT_PAD),
        transcendentals=b_pad * OUT_PAD,
        bytes_accessed=(b_pad * LATENT * 4 + LATENT * HID * 4 + HID * OUT_PAD * 2
                        + (HID + OUT_PAD) * 4 + b_pad * OUT_PAD * 4),
    )

    out_padded = pl.pallas_call(
        decoder_kernel,
        out_shape=jax.ShapeDtypeStruct((b_pad, OUT_PAD), jnp.float32),
        grid_spec=pltpu.PrefetchScalarGridSpec(
            num_scalar_prefetch=0,
            grid=(b_pad // tb,),
            in_specs=[
                pl.BlockSpec((tb, LATENT), lambda i: (i, 0)),          # z: tiled over batch
                pl.BlockSpec((LATENT, HID), lambda i: (0, 0)),          # W1: resident
                pl.BlockSpec((HID, OUT_PAD), lambda i: (0, 0)),         # W2: resident
                pl.BlockSpec((1, HID + OUT_PAD), lambda i: (0, 0)),     # packed biases: resident
            ],
            out_specs=pl.BlockSpec((tb, OUT_PAD), lambda i: (i, 0)),
        ),
        compiler_params=pltpu.CompilerParams(dimension_semantics=("parallel",)),
        cost_estimate=cost,
    )(z, w1_fused, w2_pad, b_packed)

    # padded lanes 64:128 hold sigmoid(0)=0.5; slice+reshape fuse into this jit.
    return out_padded[:B, :OUT_VALID].reshape(B, 1, 8, 8)


# ---------------- driver ----------------

if __name__ == "__main__":
    B = 8

    key = jax.random.PRNGKey(0)
    k_z, k_wfc, k_bfc, k_w1, k_b1, k_w2, k_b2 = jax.random.split(key, 7)

    # deterministic synthetic parameters (shapes match the PyTorch module)
    z = jax.random.normal(k_z, (B, LATENT), jnp.float32)
    wfc = jax.random.normal(k_wfc, (LATENT, 64 * 2 * 2), jnp.float32) * 0.05  # Linear (in, out)
    bfc = jax.random.normal(k_bfc, (64 * 2 * 2,), jnp.float32) * 0.05
    w1 = jax.random.normal(k_w1, (64, 32, 3, 3), jnp.float32) * 0.05          # ConvTranspose2d(64, 32)
    b1 = jax.random.normal(k_b1, (32,), jnp.float32) * 0.05
    w2 = jax.random.normal(k_w2, (32, 1, 3, 3), jnp.float32) * 0.05           # ConvTranspose2d(32, 1)
    b2 = jax.random.normal(k_b2, (1,), jnp.float32) * 0.05

    # ---- host-side lowering + algebraic fusion ----
    M1, bias1_flat, (h1o, w1o) = convt_to_matrix(np.asarray(w1), np.asarray(b1), 2, 2, 2, 1, 1)      # 256 -> 512
    M2, bias2_flat, (h2o, w2o) = convt_to_matrix(np.asarray(w2), np.asarray(b2), h1o, w1o, 2, 1, 1)  # 512 -> 64
    assert (h2o, w2o) == (8, 8)

    wfc_np, bfc_np = np.asarray(wfc, np.float32), np.asarray(bfc, np.float32)
    # Exact fusion of fc into deconv1 (no nonlinearity between them in the PyTorch module).
    W1_fused = wfc_np @ M1                       # (32, 512), kept in f32 for accuracy
    B1_fused = bfc_np @ M1 + bias1_flat          # (512,)

    # Lane-dense padding of the last matmul: N 64 -> 128 (zero columns contribute nothing).
    M2_pad = np.zeros((M2.shape[0], OUT_PAD), np.float32)
    M2_pad[:, : M2.shape[1]] = M2
    B2_pad = np.zeros((OUT_PAD,), np.float32)
    B2_pad[: bias2_flat.shape[0]] = bias2_flat

    # Pack both biases into a single f32 operand (cuts one DMA per call).
    b_packed = np.concatenate([B1_fused, B2_pad]).reshape(1, HID + OUT_PAD).astype(np.float32)

    w1_dev = jnp.asarray(W1_fused, jnp.float32)   # f32: accuracy-positive, perf-neutral (64 KiB)
    w2_dev = jnp.asarray(M2_pad, jnp.bfloat16)    # bf16: MXU-native
    b_dev = jnp.asarray(b_packed, jnp.float32)

    out = decoder_forward(z, w1_dev, w2_dev, b_dev)
    out = jax.block_until_ready(out)

    # ---- numpy f32 reference of the exact PyTorch semantics ----
    z_np = np.asarray(z)
    h_np = z_np @ wfc_np + bfc_np
    x_np = h_np.reshape(-1, 64, 2, 2)
    x_np = np.maximum(convt_ref_np(x_np, np.asarray(w1), np.asarray(b1), 2, 1, 1), 0.0)
    x_np = convt_ref_np(x_np, np.asarray(w2), np.asarray(b2), 2, 1, 1)
    ref = 1.0 / (1.0 + np.exp(-x_np))

    assert out.shape == (B, 1, 8, 8)
    # tolerance accounts for bf16 W2 / bf16 h1 cast in the second matmul
    np.testing.assert_allclose(np.asarray(out), ref, rtol=1e-2, atol=1e-2)
    print("KERNEL_OK")
</pallas_src>

<mosaic_0001>
module attributes {stable_mosaic.version = 11 : i64} {
  func.func @decoder_kernel(%arg0: i32, %arg1: memref<8x32xf32, #tpu.memory_space<vmem>>, %arg2: memref<32x512xf32, #tpu.memory_space<vmem>>, %arg3: memref<512x128xbf16, #tpu.memory_space<vmem>>, %arg4: memref<1x640xf32, #tpu.memory_space<vmem>>, %arg5: memref<8x128xf32, #tpu.memory_space<vmem>>) attributes {dimension_semantics = [#tpu.dimension_semantics<parallel>], iteration_bounds = array<i64: 1>, scalar_prefetch = 0 : i64, scratch_operands = 0 : i64, tpu.core_type = #tpu.core_type<tc>, window_params = [{transform_indices = @transform_0, window_bounds = array<i64: 8, 32>}, {pipeline_mode = #tpu.pipeline_mode<synchronous>, transform_indices = @transform_1, window_bounds = array<i64: 32, 512>}, {pipeline_mode = #tpu.pipeline_mode<synchronous>, transform_indices = @transform_2, window_bounds = array<i64: 512, 128>}, {pipeline_mode = #tpu.pipeline_mode<synchronous>, transform_indices = @transform_3, window_bounds = array<i64: 1, 640>}, {transform_indices = @transform_4, window_bounds = array<i64: 8, 128>}]} {
    %c0 = arith.constant 0 : index
    %c0_0 = arith.constant 0 : index
    %0 = vector.load %arg4[%c0, %c0_0] : memref<1x640xf32, #tpu.memory_space<vmem>>, vector<1x512xf32>
    %c0_1 = arith.constant 0 : index
    %c512 = arith.constant 512 : index
    %1 = vector.load %arg4[%c0_1, %c512] : memref<1x640xf32, #tpu.memory_space<vmem>>, vector<1x128xf32>
    %c0_2 = arith.constant 0 : index
    %c0_3 = arith.constant 0 : index
    %2 = vector.load %arg1[%c0_2, %c0_3] : memref<8x32xf32, #tpu.memory_space<vmem>>, vector<8x32xf32>
    %c0_4 = arith.constant 0 : index
    %c0_5 = arith.constant 0 : index
    %3 = vector.load %arg2[%c0_4, %c0_5] : memref<32x512xf32, #tpu.memory_space<vmem>>, vector<32x512xf32>
    %cst = arith.constant dense<0.000000e+00> : vector<8x512xf32>
    %4 = tpu.matmul %2, %3, %cst {dimension_numbers = #tpu.dot_dimension_numbers<[1], [0], [0], [1], [0, 0, 1, 1], [], []>} : vector<8x32xf32>, vector<32x512xf32>, vector<8x512xf32> -> vector<8x512xf32>
    %5 = vector.broadcast %0 : vector<1x512xf32> to vector<8x512xf32>
    %6 = arith.addf %4, %5 : vector<8x512xf32>
    %cst_6 = arith.constant 0.000000e+00 : f32
    %7 = vector.broadcast %cst_6 : f32 to vector<8x512xf32>
    %8 = arith.maximumf %6, %7 : vector<8x512xf32>
    %9 = arith.truncf %8 : vector<8x512xf32> to vector<8x512xbf16>
    %c0_7 = arith.constant 0 : index
    %c0_8 = arith.constant 0 : index
    %10 = vector.load %arg3[%c0_7, %c0_8] : memref<512x128xbf16, #tpu.memory_space<vmem>>, vector<512x128xbf16>
    %cst_9 = arith.constant dense<0.000000e+00> : vector<8x128xf32>
    %11 = tpu.matmul %9, %10, %cst_9 {dimension_numbers = #tpu.dot_dimension_numbers<[1], [0], [0], [1], [0, 0, 1, 1], [], []>} : vector<8x512xbf16>, vector<512x128xbf16>, vector<8x128xf32> -> vector<8x128xf32>
    %12 = vector.broadcast %1 : vector<1x128xf32> to vector<8x128xf32>
    %13 = arith.addf %11, %12 : vector<8x128xf32>
    %14 = arith.negf %13 : vector<8x128xf32>
    %15 = math.exp %14 : vector<8x128xf32>
    %cst_10 = arith.constant 1.000000e+00 : f32
    %16 = vector.broadcast %cst_10 : f32 to vector<8x128xf32>
    %17 = arith.addf %16, %15 : vector<8x128xf32>
    %18 = arith.divf %16, %17 : vector<8x128xf32>
    %c0_11 = arith.constant 0 : index
    %c0_12 = arith.constant 0 : index
    %19 = vector.load %arg5[%c0_11, %c0_12] : memref<8x128xf32, #tpu.memory_space<vmem>>, vector<8x128xf32>
    tpu.vector_store %arg5[%c0_11, %c0_12], %18 {strides = array<i32>} : memref<8x128xf32, #tpu.memory_space<vmem>>, vector<8x128xf32>,
    return
  }
  func.func @transform_0(%arg0: i32) -> (i32, i32) {
    %c0_i32 = arith.constant 0 : i32
    %c0_i32_0 = arith.constant 0 : i32
    return %arg0, %c0_i32 : i32, i32
  }
  func.func @transform_1(%arg0: i32) -> (i32, i32) {
    %c0_i32 = arith.constant 0 : i32
    %c0_i32_0 = arith.constant 0 : i32
    %c0_i32_1 = arith.constant 0 : i32
    return %c0_i32, %c0_i32_0 : i32, i32
  }
  func.func @transform_2(%arg0: i32) -> (i32, i32) {
    %c0_i32 = arith.constant 0 : i32
    %c0_i32_0 = arith.constant 0 : i32
    %c0_i32_1 = arith.constant 0 : i32
    return %c0_i32, %c0_i32_0 : i32, i32
  }
  func.func @transform_3(%arg0: i32) -> (i32, i32) {
    %c0_i32 = arith.constant 0 : i32
    %c0_i32_0 = arith.constant 0 : i32
    %c0_i32_1 = arith.constant 0 : i32
    return %c0_i32, %c0_i32_0 : i32, i32
  }
  func.func @transform_4(%arg0: i32) -> (i32, i32) {
    %c0_i32 = arith.constant 0 : i32
    %c0_i32_0 = arith.constant 0 : i32
    return %arg0, %c0_i32 : i32, i32
  }
}

</mosaic_0001>

<bundles_post_ra>
// kernel: decoder_forward.1
= control target key start
LH: loop header
LB: loop body
LE: loop exit
PB: predicated region body
PF: predicated region fallthrough
CT: control target
= control target key end

     0   :  { %9 = vsyncpa [#allocation3], 0  ;;  %s845_s0 = inlined_call_operand.hbm [shape: f32[8,32], index: 0, kind: input, shape index: {}]   ;;  %s846_s1 = inlined_call_operand.hbm [shape: f32[32,512], index: 1, kind: input, shape index: {}]   ;;  %s847_s2 = inlined_call_operand.hbm [shape: bf16[512,128], index: 2, kind: input, shape index: {}]   ;;  %s848_s3 = inlined_call_operand.vmem [shape: f32[1,640], index: 3, kind: input, shape index: {}]   ;;  %s849_s4 = inlined_call_operand.vmem [shape: f32[8,128], index: 4, kind: output, shape index: {}]  }
   0x1   :  { %10 = vsyncpa [#allocation5], 0  ;;  %s794_s15 = smov [#allocation4]  }
   0x2   :  { %s26_s16 = sshll.u32 %s794_s15, 4  ;;  %s27_s16 = int_to_ptr.vmem [resolvable:$true] %s26_s16 }
   0x3   :  { %s738_s17 = scalar_lea.vmem %s27_s16, 2048  ;;  %p743_p1 = scmp.lt.s32.totalorder %s27_s16, %s27_s16 }
   0x4   :  { %p739_p0 = scmp.ne.s32.totalorder %s27_s16, %s738_s17  ;;  %p744_p2 = scmp.lt.s32.totalorder %s738_s17, %s738_s17 }
   0x6   :  { %p745_p3 = por %p744_p2, %p743_p1 }
   0x8   :  { %p746_p4 = pnand %p745_p3, %p739_p0 }
   0xa   :  { %749 = shalt.err (!%p746_p4)
}
   0xb   :  { %s795_s18 = smov 512   ;;  %s796_s19 = smov 32  }
   0xc   :  { %32 = dma.hbm_to_vmem [thread:$0]  %s846_s1, 2048, %s27_s16, [#allocation5], %s795_s18, %s795_s18, %s796_s19  }
   0xd   :  { %s797_s22 = smov [#allocation2]   ;;  %s798_s24 = smov [#allocation6]  }
   0xe   :  { %s17_s23 = sshll.u32 %s797_s22, 4  ;;  %s38_s25 = sshll.u32 %s798_s24, 4  ;;  %s18_s23 = int_to_ptr.vmem [resolvable:$true] %s17_s23  ;;  %s39_s25 = int_to_ptr.vmem [resolvable:$true] %s38_s25 }
   0xf   :  { %s758_s26 = scalar_lea.vmem %s18_s23, 128  ;;  %p763_p6 = scmp.lt.s32.totalorder %s18_s23, %s18_s23 }
  0x10   :  { %p759_p5 = scmp.ne.s32.totalorder %s18_s23, %s758_s26  ;;  %p764_p7 = scmp.lt.s32.totalorder %s758_s26, %s758_s26 }
  0x12   :  { %p765_p8 = por %p764_p7, %p763_p6 }
  0x14   :  { %p766_p9 = pnand %p765_p8, %p759_p5 }
  0x16   :  { %769 = shalt.err (!%p766_p9)
}
  0x17   :  { %20 = dma.hbm_to_vmem [thread:$0]  %s845_s0, 128, %s18_s23, [#allocation3]  }
  0x18   :  { %s778_s29 = scalar_lea.vmem %s39_s25, 4096  ;;  %p783_p11 = scmp.lt.s32.totalorder %s39_s25, %s39_s25 }
  0x19   :  { %p779_p10 = scmp.ne.s32.totalorder %s39_s25, %s778_s29  ;;  %p784_p12 = scmp.lt.s32.totalorder %s778_s29, %s778_s29 }
  0x1b   :  { %p785_p13 = por %p784_p12, %p783_p11 }
  0x1d   :  { %p786_p0 = pnand %p785_p13, %p779_p10 }
  0x1f   :  { %789 = shalt.err (!%p786_p0)
}
  0x20   :  { %s799_s1 = smov 64   ;;  %s800_s30 = smov 4  }
  0x21   :  { %44 = dma.hbm_to_vmem [thread:$0]  %s847_s2, 4096, %s39_s25, [#allocation5], %s799_s1, %s799_s1, %s800_s30  }
  0x22   :  { %790 = dma.done.wait [#allocation3], 128  }
  0x23   :  { %791 = vsyncadd [#allocation3], 4294967168 }
  0x24   :  { %792 = dma.done.wait [#allocation5], 6144  }
  0x25   :  { %793 = vsyncadd [#allocation5], 4294961152  ;;  %v801_v0 = vmov 0.0   ;;  %v73_v1 = vld [vmem:[#allocation4 + $0x68] sm:$0xff]  ;;  %v75_v2 = vld [vmem:[#allocation4 + $0x78] sm:$0xff]  ;;  %vm97_vm0 = vcmask 261120   ;;  %v77_v50 = vlaneseq }
  0x26   :  { %165 = vmatprep.mubr.f32.mxu0 %v801_v0  ;;  %236 = vmatprep.mubr.f32.mxu1 %v801_v0  ;;  %v72_v3 = vld [vmem:[#allocation4 + $0x60] sm:$0xff]  ;;  %v74_v4 = vld [vmem:[#allocation4 + $0x70] sm:$0xff]  ;;  %v69_v5 = vld [vmem:[#allocation4 + $0x48] sm:$0xff] }
  0x27   :  { %125 = vmatprep.subr.mxu0 %v73_v1  ;;  %196 = vmatprep.subr.mxu1 %v75_v2  ;;  %v71_v6 = vld [vmem:[#allocation4 + $0x58] sm:$0xff]  ;;  %v68_v7 = vld [vmem:[#allocation4 + $0x40] sm:$0xff]  ;;  %v70_v8 = vld [vmem:[#allocation4 + $0x50] sm:$0xff]  ;;  %v78_v51 = vshrl.u32 %v77_v50, 7 }
  0x28   :  { %126 = vmatpush1.msra.mxu0 %v72_v3  ;;  %197 = vmatpush1.msra.mxu1 %v74_v4  ;;  %v65_v9 = vld [vmem:[#allocation4 + $0x28] sm:$0xff]  ;;  %v67_v10 = vld [vmem:[#allocation4 + $0x38] sm:$0xff]  ;;  %v64_v11 = vld [vmem:[#allocation4 + $0x20] sm:$0xff] }
  0x29   :  { %127 = vmatprep.subr.mxu0 %v69_v5  ;;  %198 = vmatprep.subr.mxu1 %v71_v6  ;;  %v66_v12 = vld [vmem:[#allocation4 + $0x30] sm:$0xff]  ;;  %v61_v13 = vld [vmem:[#allocation4 + $0x8] sm:$0xff]  ;;  %v63_v14 = vld [vmem:[#allocation4 + $0x18] sm:$0xff]  ;;  %v79_v52 = vsub.s32 0, %v78_v51  ;;  %v87_v53 = vsub.s32 2, %v78_v51  ;;  %v83_v55 = vsub.s32 1, %v78_v51 }
  0x2a   :  { %128 = vmatpush1.msra.mxu0 %v68_v7  ;;  %199 = vmatpush1.msra.mxu1 %v70_v8  ;;  %v60_v15 = vld [vmem:[#allocation4] sm:$0xff]  ;;  %v62_v16 = vld [vmem:[#allocation4 + $0x10] sm:$0xff]  ;;  %v59_v17 = vld [vmem:[#allocation2] sm:$0xff]  ;;  %v91_v56 = vsub.s32 3, %v78_v51 }
  0x2b   :  { %129 = vmatprep.subr.mxu0 %v65_v9  ;;  %200 = vmatprep.subr.mxu1 %v67_v10  ;;  %v694_v18 = vld [vmem:[#allocation6 + $0x78] sm:$0xff]   ;;  %v698_v22 = vld [vmem:[#allocation6 + $0x70] sm:$0xff]   ;;  %v702_v26 = vld [vmem:[#allocation6 + $0x68] sm:$0xff]  }
  0x2c   :  { %130 = vmatpush1.msra.mxu0 %v64_v11  ;;  %201 = vmatpush1.msra.mxu1 %v66_v12  ;;  %v695_v19 = vld [vmem:[#allocation6 + $0xf8] sm:$0xff]   ;;  %v699_v23 = vld [vmem:[#allocation6 + $0xf0] sm:$0xff]   ;;  %v703_v27 = vld [vmem:[#allocation6 + $0xe8] sm:$0xff]  }
  0x2d   :  { %131 = vmatprep.subr.mxu0 %v61_v13  ;;  %202 = vmatprep.subr.mxu1 %v63_v14  ;;  %v696_v20 = vld [vmem:[#allocation6 + $0x38] sm:$0xff]   ;;  %v700_v24 = vld [vmem:[#allocation6 + $0x30] sm:$0xff]   ;;  %v704_v28 = vld [vmem:[#allocation6 + $0x28] sm:$0xff]  }
  0x2e   :  { %132 = vmatpush1.msra.mxu0 %v60_v15  ;;  %203 = vmatpush1.msra.mxu1 %v62_v16  ;;  %v697_v21 = vld [vmem:[#allocation6 + $0xb8] sm:$0xff]   ;;  %v701_v25 = vld [vmem:[#allocation6 + $0xb0] sm:$0xff]   ;;  %v705_v29 = vld [vmem:[#allocation6 + $0xa8] sm:$0xff]  }
  0x2f   :  { %606 = vmatmul.mubr.msk.f32.vlgmr.msra.gmra.mxu0 %vm97_vm0, %v59_v17  ;;  %607 = vmatmul.mubr.msk.f32.vlgmr.msra.gmra.mxu1 %vm97_vm0, %v59_v17  ;;  %v706_v30 = vld [vmem:[#allocation6 + $0x60] sm:$0xff]   ;;  %v710_v34 = vld [vmem:[#allocation6 + $0x58] sm:$0xff]   ;;  %v714_v38 = vld [vmem:[#allocation6 + $0x50] sm:$0xff]  }
  0x30   :  { %642 = vmatprep.subr.bf16.mxu0 %v694_v18  ;;  %664 = vmatprep.subr.bf16.mxu1 %v695_v19  ;;  %v707_v31 = vld [vmem:[#allocation6 + $0xe0] sm:$0xff]   ;;  %v711_v35 = vld [vmem:[#allocation6 + $0xd8] sm:$0xff]   ;;  %v715_v39 = vld [vmem:[#allocation6 + $0xd0] sm:$0xff]  }
  0x31   :  { %643 = vmatpush3.bf16.msra.mxu0 %v696_v20  ;;  %665 = vmatpush3.bf16.msra.mxu1 %v697_v21  ;;  %v708_v32 = vld [vmem:[#allocation6 + $0x20] sm:$0xff]   ;;  %v712_v36 = vld [vmem:[#allocation6 + $0x18] sm:$0xff]   ;;  %v716_v40 = vld [vmem:[#allocation6 + $0x10] sm:$0xff]  }
  0x32   :  { %644 = vmatprep.subr.bf16.mxu0 %v698_v22  ;;  %666 = vmatprep.subr.bf16.mxu1 %v699_v23  ;;  %v709_v33 = vld [vmem:[#allocation6 + $0xa0] sm:$0xff]   ;;  %v713_v37 = vld [vmem:[#allocation6 + $0x98] sm:$0xff]   ;;  %v717_v41 = vld [vmem:[#allocation6 + $0x90] sm:$0xff]  }
  0x33   :  { %v718_v42 = vld [vmem:[#allocation6 + $0x48] sm:$0xff]   ;;  %v722_v46 = vld [vmem:[#allocation6 + $0x40] sm:$0xff]   ;;  %v57_v54 = vld [vmem:[%s848_s3] sm:$0xf] }
  0x34   :  { %v719_v43 = vld [vmem:[#allocation6 + $0xc8] sm:$0xff]   ;;  %v723_v47 = vld [vmem:[#allocation6 + $0xc0] sm:$0xff]   ;;  %v80_v57 = vrot.slane %v57_v54, %v79_v52  ;;  %v88_v58 = vrot.slane %v57_v54, %v87_v53  ;;  %v84_v59 = vrot.slane %v57_v54, %v83_v55  ;;  %v92_v60 = vrot.slane %v57_v54, %v91_v56  ;;  %v608_v15 = vld [vmem:[%s848_s3 + $0x4] ss:$0 sm:$0xff] }
  0x35   :  { %645 = vmatpush3.bf16.msra.mxu0 %v700_v24  ;;  %667 = vmatpush3.bf16.msra.mxu1 %v701_v25  ;;  %v720_v44 = vld [vmem:[#allocation6 + $0x8] sm:$0xff]   ;;  %v724_v48 = vld [vmem:[#allocation6] sm:$0xff]  }
  0x36   :  { %646 = vmatprep.subr.bf16.mxu0 %v702_v26  ;;  %668 = vmatprep.subr.bf16.mxu1 %v703_v27  ;;  %v721_v45 = vld [vmem:[#allocation6 + $0x88] sm:$0xff]   ;;  %v725_v49 = vld [vmem:[#allocation6 + $0x80] sm:$0xff]  }
  0x39   :  { %647 = vmatpush3.bf16.msra.mxu0 %v704_v28  ;;  %669 = vmatpush3.bf16.msra.mxu1 %v705_v29 }
  0x3a   :  { %648 = vmatprep.subr.bf16.mxu0 %v706_v30  ;;  %670 = vmatprep.subr.bf16.mxu1 %v707_v31 }
  0x3d   :  { %649 = vmatpush3.bf16.msra.mxu0 %v708_v32  ;;  %671 = vmatpush3.bf16.msra.mxu1 %v709_v33 }
  0x3e   :  { %650 = vmatprep.subr.bf16.mxu0 %v710_v34  ;;  %672 = vmatprep.subr.bf16.mxu1 %v711_v35 }
  0x41   :  { %651 = vmatpush3.bf16.msra.mxu0 %v712_v36  ;;  %673 = vmatpush3.bf16.msra.mxu1 %v713_v37 }
  0x42   :  { %652 = vmatprep.subr.bf16.mxu0 %v714_v38  ;;  %674 = vmatprep.subr.bf16.mxu1 %v715_v39 }
  0x45   :  { %653 = vmatpush3.bf16.msra.mxu0 %v716_v40  ;;  %675 = vmatpush3.bf16.msra.mxu1 %v717_v41 }
  0x46   :  { %654 = vmatprep.subr.bf16.mxu0 %v718_v42  ;;  %676 = vmatprep.subr.bf16.mxu1 %v719_v43 }
  0x49   :  { %655 = vmatpush3.bf16.msra.mxu0 %v720_v44  ;;  %677 = vmatpush3.bf16.msra.mxu1 %v721_v45 }
  0x4a   :  { %656 = vmatprep.subr.bf16.mxu0 %v722_v46  ;;  %678 = vmatprep.subr.bf16.mxu1 %v723_v47 }
  0x4d   :  { %657 = vmatpush3.bf16.msra.mxu0 %v724_v48  ;;  %679 = vmatpush3.bf16.msra.mxu1 %v725_v49 }
  0xef   :  { %v167_v61 = vpop.f32.mrf.mxu0  ;;  %v238_v62 = vpop.f32.mrf.mxu1 }
  0xf0   :  { %v168_v63 = vadd.f32 %v167_v61, %v80_v57  ;;  %v239_v0 = vadd.f32 %v238_v62, %v88_v58 }
  0xf1   :  { %v169_v1 = vpop.f32.mrf.mxu0  ;;  %v240_v2 = vpop.f32.mrf.mxu1 }
  0xf2   :  { %v245_v3 = vmax.f32 %v239_v0, 0.0  ;;  %v170_v4 = vadd.f32 %v169_v1, %v84_v59  ;;  %v241_v5 = vadd.f32 %v240_v2, %v92_v60  ;;  %v243_v6 = vmax.f32 %v168_v63, 0.0 }
  0xf4   :  { %v244_v7 = vmax.f32 %v170_v4, 0.0  ;;  %v246_v8 = vmax.f32 %v241_v5, 0.0  ;;  %v249_v9 = vpack.c.bf16 %v245_v3, %v245_v3  ;;  %v247_v12 = vpack.c.bf16 %v243_v6, %v243_v6 }
  0xf6   :  { %v248_v10 = vpack.c.bf16 %v244_v7, %v244_v7  ;;  %v250_v11 = vpack.c.bf16 %v246_v8, %v246_v8 }
  0xf8   :  { %545 = vmatprep.mubr.bf16.mxu0 %v248_v10  ;;  %585 = vmatprep.mubr.bf16.mxu1 %v250_v11 }
  0xf9   :  { %546 = vmatmul.mubr.bf16.vlgmr.msra.gmra.mxu0 %v247_v12  ;;  %586 = vmatmul.mubr.bf16.vlgmr.msra.gmra.mxu1 %v249_v9 }
 0x1b9   :  { %v658_v13 = vpop.f32.mrf.mxu0  ;;  %v680_v14 = vpop.f32.mrf.mxu1 }
 0x1bb   :  { %v659_v16 = vpop.f32.mrf.mxu0  ;;  %v681_v17 = vpop.f32.mrf.mxu1 }
 0x1bc   :  { %v660_v18 = vadd.f32 %v659_v16, %v658_v13  ;;  %v682_v22 = vadd.f32 %v681_v17, %v680_v14 }
 0x1bd   :  { %v661_v19 = vpop.f32.mrf.mxu0  ;;  %v683_v20 = vpop.f32.mrf.mxu1 }
 0x1be   :  { %v548_v21 = vadd.f32 %v660_v18, %v608_v15 }
 0x1bf   :  { %v662_v23 = vpop.f32.mrf.mxu0  ;;  %v684_v24 = vpop.f32.mrf.mxu1 }
 0x1c0   :  { %v588_v25 = vadd.f32 %v682_v22, %v548_v21 }
 0x1c2   :  { %v641_v26 = vmul.f32 -1.442695, %v588_v25 }
 0x1c4   :  { %726 = vpow2.f32 %v641_v26 }
 0x1d1   :  { %v727_v27 = vpop.eup %726 }
 0x1d2   :  { %v596_v28 = vadd.f32 1.0, %v727_v27 }
 0x1d4   :  { %728 = vrcp.f32 %v596_v28 }
 0x1e1   :  { %v729_v29 = vpop.eup %728 }
 0x1e2   :  { %599 = vst [vmem:[%s849_s4] sm:$0xff] %v729_v29 }
 0x1e3   :  { %604 = vsyncpa [#allocation3], 1 }
 0x1e4   :  { %605 = vsyncpa [#allocation5], 1 }

</bundles_post_ra>
